<compile_context>
chip_gen: v7x
topology: tpu7x:2x2x1
jax: 0.10.0
libtpu: 0.0.40
codegen_flags: <defaults>
</compile_context>

<pallas_src>
import jax
import jax.numpy as jnp
from jax.experimental import pallas as pl
from jax.experimental.pallas import tpu as pltpu


def _bmm_kernel(x_ref, y_ref, o_ref, acc_ref):
    """One (b, i, j, k) grid step: acc += x_tile @ y_tile; store on last k."""
    @pl.when(pl.program_id(3) == 0)
    def _():
        acc_ref[...] = jnp.zeros_like(acc_ref)

    # x_ref: (1, tm, tk), y_ref: (1, tk, tn) -> accumulate in f32 on the MXU.
    acc_ref[...] += jnp.dot(
        x_ref[0], y_ref[0], preferred_element_type=jnp.float32
    )

    @pl.when(pl.program_id(3) == pl.num_programs(3) - 1)
    def _():
        o_ref[0] = acc_ref[...].astype(o_ref.dtype)


def _pick_tile(dim, preferred, align):
    """Largest multiple of `align` that divides `dim` and is <= `preferred`.

    Falls back to the full dimension, which is always a legal block extent
    (the (8,128) constraint only applies to partial blocks).
    """
    t = min(preferred, dim)
    t -= t % align
    while t >= align:
        if dim % t == 0:
            return t
        t -= align
    return dim


@jax.jit
def pallas_bmm(x, y):
    """Equivalent of torch.bmm(x, y) on TPU via Pallas."""
    B, M, K = x.shape
    B2, K2, N = y.shape
    assert B == B2 and K == K2, "incompatible bmm shapes"

    out_dtype = jnp.result_type(x.dtype, y.dtype)

    # Sublane (second-to-last) dims need multiples of 8, lane (last) dims need
    # multiples of 128 -- unless the full extent is used.
    tm = _pick_tile(M, 256, 8)     # sublane dim of x / out blocks
    tn = _pick_tile(N, 256, 128)   # lane dim of y / out blocks
    tk = _pick_tile(K, 512, 128)   # lane dim of x block, sublane dim of y block

    grid = (B, M // tm, N // tn, K // tk)

    return pl.pallas_call(
        _bmm_kernel,
        out_shape=jax.ShapeDtypeStruct((B, M, N), out_dtype),
        grid_spec=pltpu.PrefetchScalarGridSpec(
            num_scalar_prefetch=0,
            grid=grid,
            in_specs=[
                pl.BlockSpec((1, tm, tk), lambda b, i, j, k: (b, i, k)),
                pl.BlockSpec((1, tk, tn), lambda b, i, j, k: (b, k, j)),
            ],
            out_specs=pl.BlockSpec((1, tm, tn), lambda b, i, j, k: (b, i, j)),
            scratch_shapes=[pltpu.VMEM((tm, tn), jnp.float32)],
        ),
        compiler_params=pltpu.CompilerParams(
            # K is the reduction axis -> "arbitrary" (and last in the grid);
            # B / M / N are independent -> "parallel" (megacore on v7x).
            dimension_semantics=("parallel", "parallel", "parallel", "arbitrary"),
        ),
    )(x, y)


if __name__ == "__main__":
    key = jax.random.PRNGKey(0)
    k1, k2, k3, k4 = jax.random.split(key, 4)

    # Small, module-consistent shapes: batch=2, M=8 (seq), K=32 (hidden), N=16.
    x_small = jax.random.normal(k1, (2, 8, 32), dtype=jnp.float32)
    y_small = jax.random.normal(k2, (2, 32, 16), dtype=jnp.float32)

    out_small = pallas_bmm(x_small, y_small)
    jax.block_until_ready(out_small)
    ref_small = jnp.einsum(
        "bmk,bkn->bmn", x_small, y_small, preferred_element_type=jnp.float32
    )
    assert jnp.allclose(out_small, ref_small, atol=1e-4, rtol=1e-4), \
        "mismatch vs reference (small)"

    # A second, MXU-tile-aligned case that exercises the tiled / multi-step-K
    # path (tm=128, tn=256, tk=512, 2 reduction steps).
    x_big = jax.random.normal(k3, (2, 128, 1024), dtype=jnp.float32)
    y_big = jax.random.normal(k4, (2, 1024, 256), dtype=jnp.float32)

    out_big = pallas_bmm(x_big, y_big)
    jax.block_until_ready(out_big)
    ref_big = jnp.einsum(
        "bmk,bkn->bmn", x_big, y_big, preferred_element_type=jnp.float32
    )
    assert jnp.allclose(out_big, ref_big, atol=1e-2, rtol=1e-3), \
        "mismatch vs reference (tiled)"

    print("KERNEL_OK")
</pallas_src>

<mosaic_0001>
module attributes {stable_mosaic.version = 11 : i64} {
  func.func @_bmm_kernel(%arg0: i32, %arg1: i32, %arg2: i32, %arg3: i32, %arg4: memref<1x8x32xf32, #tpu.memory_space<vmem>>, %arg5: memref<1x32x16xf32, #tpu.memory_space<vmem>>, %arg6: memref<1x8x16xf32, #tpu.memory_space<vmem>>, %arg7: memref<8x16xf32, #tpu.memory_space<vmem>>) attributes {dimension_semantics = [#tpu.dimension_semantics<parallel>, #tpu.dimension_semantics<parallel>, #tpu.dimension_semantics<parallel>, #tpu.dimension_semantics<arbitrary>], iteration_bounds = array<i64: 2, 1, 1, 1>, scalar_prefetch = 0 : i64, scratch_operands = 1 : i64, tpu.core_type = #tpu.core_type<tc>, window_params = [{transform_indices = @transform_0, window_bounds = array<i64: 1, 8, 32>}, {transform_indices = @transform_1, window_bounds = array<i64: 1, 32, 16>}, {transform_indices = @transform_2, window_bounds = array<i64: 1, 8, 16>}]} {
    %c0_i32 = arith.constant 0 : i32
    %0 = arith.cmpi eq, %arg3, %c0_i32 : i32
    %1 = arith.extui %0 : i1 to i32
    %c0_i32_0 = arith.constant 0 : i32
    %2 = arith.cmpi ne, %1, %c0_i32_0 : i32
    scf.if %2 {
      %cst_12 = arith.constant 0.000000e+00 : f32
      %14 = vector.broadcast %cst_12 : f32 to vector<8x16xf32>
      %c0_13 = arith.constant 0 : index
      %c0_14 = arith.constant 0 : index
      %15 = vector.load %arg7[%c0_13, %c0_14] : memref<8x16xf32, #tpu.memory_space<vmem>>, vector<8x16xf32>
      tpu.vector_store %arg7[%c0_13, %c0_14], %14 {strides = array<i32>} : memref<8x16xf32, #tpu.memory_space<vmem>>, vector<8x16xf32>,
    } else {
    }
    %c0 = arith.constant 0 : index
    %c0_1 = arith.constant 0 : index
    %3 = vector.load %arg7[%c0, %c0_1] : memref<8x16xf32, #tpu.memory_space<vmem>>, vector<8x16xf32>
    %c0_2 = arith.constant 0 : index
    %c0_3 = arith.constant 0 : index
    %c0_4 = arith.constant 0 : index
    %4 = vector.load %arg4[%c0_2, %c0_3, %c0_4] : memref<1x8x32xf32, #tpu.memory_space<vmem>>, vector<1x8x32xf32>
    %5 = vector.shape_cast %4 : vector<1x8x32xf32> to vector<8x32xf32>
    %c0_5 = arith.constant 0 : index
    %c0_6 = arith.constant 0 : index
    %c0_7 = arith.constant 0 : index
    %6 = vector.load %arg5[%c0_5, %c0_6, %c0_7] : memref<1x32x16xf32, #tpu.memory_space<vmem>>, vector<1x32x16xf32>
    %7 = vector.shape_cast %6 : vector<1x32x16xf32> to vector<32x16xf32>
    %cst = arith.constant dense<0.000000e+00> : vector<8x16xf32>
    %8 = tpu.matmul %5, %7, %cst {dimension_numbers = #tpu.dot_dimension_numbers<[1], [0], [0], [1], [0, 0, 1, 1], [], []>} : vector<8x32xf32>, vector<32x16xf32>, vector<8x16xf32> -> vector<8x16xf32>
    %9 = arith.addf %3, %8 : vector<8x16xf32>
    %c0_8 = arith.constant 0 : index
    %c0_9 = arith.constant 0 : index
    %10 = vector.load %arg7[%c0_8, %c0_9] : memref<8x16xf32, #tpu.memory_space<vmem>>, vector<8x16xf32>
    tpu.vector_store %arg7[%c0_8, %c0_9], %9 {strides = array<i32>} : memref<8x16xf32, #tpu.memory_space<vmem>>, vector<8x16xf32>,
    %c0_i32_10 = arith.constant 0 : i32
    %11 = arith.cmpi eq, %arg3, %c0_i32_10 : i32
    %12 = arith.extui %11 : i1 to i32
    %c0_i32_11 = arith.constant 0 : i32
    %13 = arith.cmpi ne, %12, %c0_i32_11 : i32
    scf.if %13 {
      %c0_12 = arith.constant 0 : index
      %c0_13 = arith.constant 0 : index
      %14 = vector.load %arg7[%c0_12, %c0_13] : memref<8x16xf32, #tpu.memory_space<vmem>>, vector<8x16xf32>
      %c0_14 = arith.constant 0 : index
      %c0_15 = arith.constant 0 : index
      %c0_16 = arith.constant 0 : index
      %15 = vector.load %arg6[%c0_14, %c0_15, %c0_16] : memref<1x8x16xf32, #tpu.memory_space<vmem>>, vector<1x8x16xf32>
      %16 = vector.shape_cast %15 : vector<1x8x16xf32> to vector<8x16xf32>
      %17 = vector.shape_cast %14 : vector<8x16xf32> to vector<1x8x16xf32>
      tpu.vector_store %arg6[%c0_14, %c0_15, %c0_16], %17 {strides = array<i32>} : memref<1x8x16xf32, #tpu.memory_space<vmem>>, vector<1x8x16xf32>,
    } else {
    }
    return
  }
  func.func @transform_0(%arg0: i32, %arg1: i32, %arg2: i32, %arg3: i32) -> (i32, i32, i32) {
    %c0_i32 = arith.constant 0 : i32
    return %arg0, %arg1, %arg3 : i32, i32, i32
  }
  func.func @transform_1(%arg0: i32, %arg1: i32, %arg2: i32, %arg3: i32) -> (i32, i32, i32) {
    %c0_i32 = arith.constant 0 : i32
    return %arg0, %arg3, %arg2 : i32, i32, i32
  }
  func.func @transform_2(%arg0: i32, %arg1: i32, %arg2: i32, %arg3: i32) -> (i32, i32, i32) {
    %c0_i32 = arith.constant 0 : i32
    return %arg0, %arg1, %arg2 : i32, i32, i32
  }
}

</mosaic_0001>

<bundles_post_ra>
// kernel: pallas_bmm.1
= control target key start
LH: loop header
LB: loop body
LE: loop exit
PB: predicated region body
PF: predicated region fallthrough
CT: control target
= control target key end

     0   :  { %7 = vsyncpa [#allocation4], 0  ;;  %s762_s0 = inlined_call_operand.vmem [shape: f32[2,8,32], index: 0, kind: input, shape index: {}]   ;;  %s763_s1 = inlined_call_operand.vmem [shape: f32[2,32,16], index: 1, kind: input, shape index: {}]   ;;  %s764_s2 = inlined_call_operand.hbm [shape: f32[2,8,16], index: 2, kind: output, shape index: {}]  }
   0x1   :  { %9 = vsyncpa [#allocation4 + $0x1], 0  ;;  %s644_s9 = smov 0   ;;  %s646_s10 = smov 0  }
   0x2   :  { %s648_s11 = smov 0   ;;  %s650_s12 = smov 0  }
   0x3   :  { %s652_s13 = smov 0   ;;  %s654_s14 = smov 0  }
   0x4 LB: > { %s450_s15 = sadd.s32 4294967295, %s623_s14   ;;  %s451_s16 = sadd.s32 4294967294, %s623_s14   ;;  %s623_s14 = sphi %s654_s14, %s15_s14   ;;  %s619_s13 = sphi %s652_s13, %s771_s13   ;;  %s615_s12 = sphi %s650_s12, %s770_s12   ;;  %s611_s11 = sphi %s648_s11, %s769_s11   ;;  %s607_s10 = sphi %s646_s10, %s768_s10   ;;  %s603_s9 = sphi %s644_s9, %s767_s9  }
   0x5   : > { %s41_s17 = sadd.s32 1, %s619_s13  ;;  %s112_s18 = sadd.s32 1, %s611_s11 }
   0x6   : > { %p43_p0 = scmp.ge.s32.totalorder %s41_s17, 2  ;;  %p122_p1 = scmp.ne.s32.totalorder %s611_s11, %s607_s10 }
   0x7   : > { %p123_p2 = scmp.eq.s32.totalorder %s450_s15, 1  ;;  %p128_p3 = scmp.ne.s32.totalorder %s607_s10, %s603_s9 }
   0x8   : > { %s773_s17 = smov (%p43_p0, %s41_s17), 0  ;;  %p129_p5 = scmp.eq.s32.totalorder %s451_s16, 1 }
   0x9   : > { %p684_p4 = por %p123_p2, %p122_p1  ;;  %s105_s20 = ssub.s32 %s619_s13, %s773_s17 }
   0xa   : > { %p454_p6 = scmp.ge.s32.totalorder %s623_s14, 1  ;;  %p110_p7 = scmp.eq.s32.totalorder %s105_s20, 0 }
   0xb   : > { %p691_p8 = por %p129_p5, %p128_p3  ;;  %p176_p9 = scmp.lt.s32.totalorder %s623_s14, 3 }
   0xc   : > { %s697_s22 = scalar_select %p110_p7, %s611_s11, %s112_s18  }
   0xd   : > { %p177_p10 = pnand %p454_p6, %p176_p9 }
   0xe   : > { %p215_p11 = scmp.lt.s32.totalorder (!%p177_p10), %s615_s12, 1  ;;  %vm242_vm0 = vcmask (!%p177_p10), 130048   ;;  %v625_v0 = vmov (!%p177_p10), 0.0|0.0   ;;  %v626_v1 = vmov (!%p177_p10), 0.0   ;;  %vm627_vm1 = vmmov (!%p177_p10), 0   ;;  %s212_s4 = sand.u32 (!%p177_p10), 1, %s607_s10  }
   0xf   : > { %180 = sbr.rel (%p177_p10) target bundleno = 272 (0x110), region = 28  ;;  %481 = vmatprep.subr.bf16.mxu0 (!%p177_p10), %v625_v0  ;;  %243 = vst.msk [vmem:[#allocation2] sm:$0xff] (!%p177_p10), %vm242_vm0, %v626_v1  ;;  %478 = vmatprep.mubr.msk.f32.mxu0 (!%p177_p10), %vm627_vm1, %v626_v1  ;;  %vm250_vm2 = vcmask (!%p177_p10), 261120   ;;  %s455_s5 = sshll.u32 (!%p177_p10), %s212_s4, 3 }
  0x10   : > { %s461_s6 = sshll.u32 (!%p177_p10), %s615_s12, 7  ;;  %s214_s7 = scalar_lea.vmem (!%p177_p10), [#allocation3], %s455_s5 }
  0x11   : > { %s348_s8 = sshll.u32 (!%p177_p10), %s214_s7, 4  ;;  %s714_s18 = scalar_lea.hbm (!%p177_p10), %s764_s2, %s461_s6  ;;  %s716_s8 = int_to_ptr.vmem [resolvable:$true] %s348_s8 }
  0x12   : > { %s333_s20 = scalar_lea.sflag (!%p177_p10), [#allocation4], %s212_s4 }
  0x16   : > { %s216_s23 = scalar_select %p215_p11, %s615_s12, 1  ;;  %v244_v9 = vld [vmem:[#allocation2] sm:$0xff] }
  0x17   : > { %s628_s12 = smov [#allocation3]  }
  0x18   : > { %s464_s24 = sshll.u32 %s216_s23, 5  ;;  %s456_s28 = sshll.u32 %s216_s23, 3 }
  0x19   : > { %s236_s27 = scalar_lea.vmem %s763_s1, %s464_s24  ;;  %s224_s3 = scalar_lea.vmem %s762_s0, %s456_s28 }
  0x1a   : > { %v246_v2 = vld [vmem:[%s236_s27] sm:$0xff]  ;;  %v247_v3 = vld [vmem:[%s236_s27 + $0x8] sm:$0xff]  ;;  %v248_v4 = vld [vmem:[%s236_s27 + $0x10] sm:$0xff]  ;;  %s545_s23 = scalar_lea.vmem %s716_s8, 128  ;;  %s549_s24 = sshll.u32 %s628_s12, 4  ;;  %s550_s24 = int_to_ptr.vmem [resolvable:$false] %s549_s24 }
  0x1b   : > { %v482_v5 = vpack.c.bf16 %v247_v3, %v246_v2  ;;  %v249_v6 = vld [vmem:[%s236_s27 + $0x18] sm:$0xff]  ;;  %v245_v8 = vld [vmem:[%s224_s3] sm:$0xff]  ;;  %p546_p12 = scmp.ne.s32.totalorder %s716_s8, %s545_s23  ;;  %s551_s25 = scalar_lea.vmem %s550_s24, 256 }
  0x1c   : > { %v485_v7 = vpack.c.bf16 %v249_v6, %v248_v4  ;;  %p552_p1 = scmp.lt.s32.totalorder %s716_s8, %s550_s24  ;;  %p553_p2 = scmp.lt.s32.totalorder %s551_s25, %s545_s23 }
  0x1d   : > { %483 = vmatpush3.bf16.msra.mxu0 %v482_v5  ;;  %p547_p13 = pnand %p546_p12, %p684_p4 }
  0x1e   : > { %484 = vmatprep.subr.bf16.mxu0 %v625_v0  ;;  %p554_p3 = por %p553_p2, %p552_p1 }
  0x1f   : > { %p548_p0 = pneg %p547_p13 }
  0x21   : > { %486 = vmatpush3.bf16.msra.mxu0 %v485_v7  ;;  %p555_p5 = pnand %p554_p3, %p548_p0 }
  0x24   : > { %479 = vmatmul.mubr.msk.f32.vlgmr.msra.gmra.mrb[0].mxu0 %vm250_vm2, %v245_v8 }
  0xf7   : > { %v320_v10 = vpop.f32.mrb[0].mxu0 }
  0xf8   : > { %v324_v11 = vadd.f32 %v320_v10, %v244_v9  ;;  %v480_v12 = vpop.f32.mrb[1].mxu0 }
  0xfa   : > { %326 = vst.msk [vmem:[#allocation2] sm:$0xff] %vm242_vm0, %v324_v11 }
 0x101   : > { %v330_v13 = vld [vmem:[#allocation2] sm:$0xff] }
 0x102   : > { %331 = vst.msk [vmem:[%s214_s7] sm:$0xff] %vm242_vm0, %v330_v13 }
 0x103   : > { %558 = shalt.err (!%p555_p5)
}
 0x104   : > { %s559_s26 = scalar_lea.hbm %s714_s18, 128  ;;  %s563_s29 = scalar_lea.hbm %s764_s2, 256 }
 0x105   : > { %p560_p6 = scmp.ne.s32.totalorder %s714_s18, %s559_s26  ;;  %p564_p10 = scmp.lt.u32.totalorder %s714_s18, %s764_s2 }
 0x106   : > { %p565_p11 = scmp.lt.u32.totalorder %s563_s29, %s559_s26  ;;  %p567_p13 = scmp.lt.u32.totalorder %s559_s26, %s714_s18 }
 0x107   : > { %p561_p7 = pnand %p560_p6, %p684_p4 }
 0x108   : > { %p566_p12 = por %p565_p11, %p564_p10 }
 0x109   : > { %p562_p9 = pneg %p561_p7 }
 0x10a   : > { %p568_p0 = por %p567_p13, %p566_p12 }
 0x10c   : > { %p569_p1 = pnand %p568_p0, %p562_p9 }
 0x10e   : > { %572 = shalt.err (!%p569_p1)
}
 0x10f   : > { %487 = dma.vmem_to_hbm [thread:$0]  (%p684_p4), %s716_s8, 128, %s714_s18, %s333_s20  }
 0x110 PF: > { %p493_p2 = scmp.ge.s32.totalorder %s623_s14, 2  ;;  %s360_s4 = sand.u32 1, %s603_s9  }
 0x111   : > { %s361_s5 = scalar_lea.sflag [#allocation4], %s360_s4 }
 0x112   : > { %p490_p3 = pnand %p493_p2, %p691_p8 }
 0x114   : > { %598 = dma.done.wait (!%p490_p3), %s361_s5, 128  }
 0x115   : > { %600 = vsyncadd (!%p490_p3), %s361_s5, 4294967168  ;;  %s15_s14 = sadd.s32 1, %s623_s14   ;;  %s767_s9 = smov %s607_s10 }
 0x116   : > { %p12_p5 = scmp.ge.s32.totalorder %s15_s14, 4   ;;  %s768_s10 = smov %s611_s11 }
 0x117   : > { %s769_s11 = smov %s697_s22  ;;  %s770_s12 = smov %s619_s13 }
 0x118   : > { %s771_s13 = smov %s773_s17  ;;  %14 = sbr.rel (!%p12_p5) target bundleno = 4 (0x4), region = 74 }
 0x11f   :  { %366 = vsyncpa [#allocation4], 1 }
 0x120   :  { %368 = vsyncpa [#allocation4 + $0x1], 1 }

</bundles_post_ra>
